<compile_context>
chip_gen: v5e
topology: v5e:2x2
jax: 0.10.0
libtpu: 0.0.40
codegen_flags: <defaults>
</compile_context>

<pallas_src>
import math
from functools import partial

import jax
import jax.numpy as jnp
from jax.experimental import pallas as pl
from jax.experimental.pallas import tpu as pltpu

_SQRT2 = math.sqrt(2.0)


def _round_up(x, m):
    return ((x + m - 1) // m) * m


def _vmem_capacity():
    try:
        return int(pltpu.get_tpu_info().vmem_capacity_bytes)
    except Exception:
        return 128 * 1024 * 1024


def _default_vmem_limit():
    # Adapt scoped-VMEM cap to the generation (v7x: 64 MiB phys, v5e/v6e: 128 MiB).
    return min(_vmem_capacity() * 3 // 4, 96 * 1024 * 1024)


def _pick_tn(n):
    # Lane-dense spatial tile; larger on 128 MiB parts (v5e/v6e), <=1024 on v7x.
    n128 = _round_up(n, 128)
    cap = 2048 if _vmem_capacity() >= (100 << 20) else 1024
    return min(cap, n128)


# --------------------------------------------------------------------------
# Kernel 1: style mapping network  (PixelNorm + n_mlp x [EqualLinear +
# fused leaky-relu]).  Operands padded to (8, 128) tiles; scales pre-folded;
# weights stored bf16 with f32 accumulation.
# --------------------------------------------------------------------------
def _style_mlp_kernel(z_ref, wT_ref, b_ref, o_ref, *, n_mlp, inv_d):
    x = z_ref[...].astype(jnp.float32)                          # (Bp, Dp)
    # PixelNorm over the true feature dim (padded lanes are zero).
    x = x * jax.lax.rsqrt(jnp.sum(x * x, axis=1, keepdims=True) * inv_d + 1e-8)
    for l in range(n_mlp):
        h = jnp.dot(x.astype(jnp.bfloat16), wT_ref[l],
                    preferred_element_type=jnp.float32) + b_ref[l]
        # fused_leaky_relu: leaky_relu(x + b, 0.2) * sqrt(2)
        x = jnp.where(h >= 0.0, h, 0.2 * h) * _SQRT2
    o_ref[...] = x.astype(o_ref.dtype)


def style_mlp(z, wT_eff, b_eff):
    """wT_eff / b_eff already carry the EqualLinear scale and lr_mul."""
    B, D = z.shape
    n_mlp = wT_eff.shape[0]
    Bp, Dp = _round_up(B, 8), _round_up(D, 128)
    zp = jnp.zeros((Bp, Dp), jnp.float32).at[:B, :D].set(z.astype(jnp.float32))
    wTp = jnp.zeros((n_mlp, Dp, Dp), jnp.bfloat16).at[:, :D, :D].set(
        wT_eff.astype(jnp.bfloat16))
    bp = jnp.zeros((n_mlp, 1, Dp), jnp.float32).at[:, :, :D].set(
        b_eff.astype(jnp.float32))
    out = pl.pallas_call(
        partial(_style_mlp_kernel, n_mlp=n_mlp, inv_d=1.0 / D),
        out_shape=jax.ShapeDtypeStruct((Bp, Dp), jnp.float32),
    )(zp, wTp, bp)
    return out[:B, :D]


# --------------------------------------------------------------------------
# XLA prologue: per-batch weight modulation / demodulation (hoisted out of
# the spatial-tile loop), LFF feature map, ToRGB fusion into the adjacent
# StyledConv.
# --------------------------------------------------------------------------
def _modulate(latent, p, demod):
    # latent: (B, D) f32.  mwT already carries the EqualLinear scale; w the
    # conv scale 1/sqrt(fan_in); mb is the bias_init=1 modulation bias.
    s = latent @ p["mwT"] + p["mb"]                              # (B, Cin)
    w = p["w"][None, :, :] * s[:, None, :]                       # (B, Cout, Cin)
    if demod:
        w = w * jax.lax.rsqrt(jnp.sum(w * w, axis=2, keepdims=True) + 1e-8)
    return w


def _prepare(params, coords, latent, early_exit, second_exit):
    """Returns (lff_feat (B,hidden,N) bf16, layer_ws, layer_bs, layer_meta)."""
    B, _, H, W = coords.shape
    N = H * W
    latent = latent.astype(jnp.float32)
    coords_ncp = coords.reshape(B, 2, N).astype(jnp.float32)

    # --- hoisted LFF: sin(W @ coords + b), streamed into the fused kernel ---
    feat = jnp.sin(jnp.einsum("hc,bcn->bhn", params["lff_w"], coords_ncp)
                   + params["lff_b"][None]).astype(jnp.bfloat16)

    # --- op chain exactly as in the module forward ---
    ops = [("conv", params["conv1"])]
    for i in range(params["n_intermediate"]):
        ops.append(("conv", params["linears"][2 * i]))
        ops.append(("conv", params["linears"][2 * i + 1]))
        if i == 0 and early_exit:
            ops.append(("rgb", params["to_to_rgbs"][0]))
            break
        if i == 1 and second_exit:
            ops.append(("rgb", params["to_to_rgbs"][1]))
            break
        ops.append(("rgb", params["to_rgbs"][i]))

    # Merge each ToRGB with the immediately following StyledConv (they consume
    # the same activation); the final ToRGB stays standalone.
    fused = []
    k = 0
    while k < len(ops):
        kind, p = ops[k]
        if kind == "rgb" and k + 1 < len(ops) and ops[k + 1][0] == "conv":
            fused.append((ops[k + 1][1], p))
            k += 2
        elif kind == "rgb":
            fused.append((None, p))
            k += 1
        else:
            fused.append((p, None))
            k += 1

    # --- hoisted modulation / demodulation, bf16 fused weights per layer ---
    layer_ws, layer_bs, layer_meta = [], [], []
    for conv_p, rgb_p in fused:
        parts_w, parts_b, n_conv = [], [], 0
        if conv_p is not None:
            wc = _modulate(latent, conv_p, demod=True)           # (B, Cout, Cin)
            n_conv = wc.shape[1]
            parts_w.append(wc)
            parts_b.append(conv_p["bias"])
        if rgb_p is not None:
            wr = _modulate(latent, rgb_p, demod=False)           # (B, 3, Cin)
            parts_w.append(jnp.pad(wr, ((0, 0), (0, 5), (0, 0))))      # 3 -> 8 rows
            parts_b.append(jnp.pad(rgb_p["bias"], ((0, 5), (0, 0))))
        layer_ws.append(jnp.concatenate(parts_w, axis=1).astype(jnp.bfloat16))
        layer_bs.append(jnp.concatenate(parts_b, axis=0).astype(jnp.float32))
        layer_meta.append((n_conv, rgb_p is not None))
    return feat, layer_ws, layer_bs, layer_meta


# --------------------------------------------------------------------------
# Kernel 2: fused generator chain, matmul-only body.  Grid = (batch, tile).
# Per fused layer:  out = W_mod @ x + b  (MXU, bf16 in / f32 acc);
#   rows [:n_conv]         -> leaky_relu * sqrt(2)  -> next activation
#   rows [n_conv:n_conv+8] -> ToRGB skip accumulation (zero-padded 3 -> 8)
# --------------------------------------------------------------------------
def _cips_fused_kernel(*refs, layer_meta):
    n_layers = len(layer_meta)
    feat_ref, bstack_ref = refs[0], refs[1]
    w_refs = refs[2:2 + n_layers]
    o_ref = refs[2 + n_layers]

    x = feat_ref[0]                                   # (hidden, tn) bf16
    tn = x.shape[1]
    rgb = jnp.zeros((8, tn), jnp.float32)

    for l, (n_conv, has_rgb) in enumerate(layer_meta):
        w = w_refs[l][0]                              # (Cp, Cin) bf16, pre-modulated
        cp = w.shape[0]
        out = jnp.dot(w, x, preferred_element_type=jnp.float32)     # (Cp, tn)
        out = out + bstack_ref[l][:cp, :]
        if n_conv > 0:                                # StyledConv + FusedLeakyReLU
            h = out[:n_conv]
            h = jnp.where(h >= 0.0, h, 0.2 * h) * _SQRT2
            x = h.astype(jnp.bfloat16)
        if has_rgb:                                   # ToRGB skip accumulation
            rgb = rgb + out[n_conv:n_conv + 8]
    o_ref[0] = rgb.astype(o_ref.dtype)                # full 8-sublane store


def cips_fused(feat_bhn, layer_ws, layer_bs, layer_meta, *, tn=None):
    B, hidden, N = feat_bhn.shape
    if tn is None:
        tn = _pick_tn(N)
    tn = min(tn, _round_up(N, 128))
    Np = _round_up(N, tn)
    if Np != N:
        feat_bhn = jnp.pad(feat_bhn, ((0, 0), (0, 0), (0, Np - N)))
    grid = (B, Np // tn)

    # One stacked, lane-padded-once bias buffer instead of L separate ones.
    cmax = max(b.shape[0] for b in layer_bs)
    bstack = jnp.stack([jnp.pad(b, ((0, cmax - b.shape[0]), (0, 0)))
                        for b in layer_bs])                       # (L, Cmax, 1)

    kernel = partial(_cips_fused_kernel, layer_meta=tuple(layer_meta))
    out_shape = jax.ShapeDtypeStruct((B, 8, Np), jnp.float32)
    out_spec = pl.BlockSpec((1, 8, tn), lambda b, n: (b, 0, n))
    cparams = pltpu.CompilerParams(
        dimension_semantics=("parallel", "parallel"),
        vmem_limit_bytes=_default_vmem_limit())

    def build_specs(single_buffer):
        def wspec(shape, imap):
            if single_buffer:
                return pl.BlockSpec(shape, imap, pipeline_mode=pl.Buffered(1))
            return pl.BlockSpec(shape, imap)
        specs = [
            pl.BlockSpec((1, hidden, tn), lambda b, n: (b, 0, n)),   # streamed feat
            wspec(bstack.shape, lambda b, n: (0, 0, 0)),             # biases (const)
        ]
        for w in layer_ws:                                           # per-batch weights
            specs.append(wspec((1,) + w.shape[1:], lambda b, n: (b, 0, 0)))
        return specs

    def run(single_buffer):
        return pl.pallas_call(
            kernel, out_shape=out_shape, grid=grid,
            in_specs=build_specs(single_buffer), out_specs=out_spec,
            compiler_params=cparams,
        )(feat_bhn, bstack, *layer_ws)

    try:
        out = run(True)               # single-buffered weights (VMEM saver)
        out.block_until_ready()
    except Exception:
        out = run(False)              # fallback: default double buffering
    return out[:, :, :N] if Np != N else out


# --------------------------------------------------------------------------
# Parameter initialization (deterministic, synthetic — mirrors module shapes;
# static scales pre-folded; modulation math kept in f32).
# --------------------------------------------------------------------------
def init_params(key, *, size, hidden_size, style_dim, n_mlp, lr_mlp,
                channel_multiplier, base=512):
    channels = {0: base, 1: base, 2: base, 3: base,
                4: base // 2 * channel_multiplier,
                5: base // 4 * channel_multiplier,
                6: base // 8 * channel_multiplier,
                7: base // 16 * channel_multiplier,
                8: base // 32 * channel_multiplier}
    log_size = int(math.log2(size))
    n_intermediate = log_size - 1

    keys = iter(jax.random.split(key, 512))
    nk = lambda: next(keys)

    params = {"channels": channels, "n_intermediate": n_intermediate}

    # LFF: ConLinear(2, hidden, is_first=True)
    lim = math.sqrt(9.0 / 2.0)
    params["lff_w"] = jax.random.uniform(nk(), (hidden_size, 2), jnp.float32, -lim, lim)
    params["lff_b"] = jax.random.uniform(nk(), (hidden_size, 1), jnp.float32,
                                         -1.0 / math.sqrt(2.0), 1.0 / math.sqrt(2.0))

    # Style MLP: EqualLinear weight randn(out,in)/lr_mul, runtime scale
    # (1/sqrt(in))*lr_mul -> effective wT = randn / sqrt(in); bias*lr_mul = 0.
    params["style_wT"] = (jax.random.normal(nk(), (n_mlp, style_dim, style_dim),
                                            jnp.float32) / math.sqrt(style_dim)
                          ).astype(jnp.bfloat16)
    params["style_b"] = jnp.zeros((n_mlp, 1, style_dim), jnp.float32)

    mod_scale = 1.0 / math.sqrt(style_dim)

    def styled_conv_p(cin, cout):
        conv_scale = 1.0 / math.sqrt(cin)              # fan_in = cin * 1 * 1
        return {"w": jax.random.normal(nk(), (cout, cin), jnp.float32) * conv_scale,
                "mwT": jax.random.normal(nk(), (style_dim, cin), jnp.float32) * mod_scale,
                "mb": jnp.ones((1, cin), jnp.float32),   # modulation bias_init = 1
                "bias": jnp.zeros((cout, 1), jnp.float32)}

    params["conv1"] = styled_conv_p(hidden_size, channels[0])
    linears, to_rgbs, to_to_rgbs = [], [], []
    in_ch = channels[0]
    for i in range(n_intermediate):
        out_ch = channels[i]
        linears.append(styled_conv_p(in_ch, out_ch))
        linears.append(styled_conv_p(out_ch, out_ch))
        to_rgbs.append(styled_conv_p(out_ch, 3))
        to_to_rgbs.append(styled_conv_p(out_ch, 3))
        in_ch = out_ch
    params["linears"] = linears
    params["to_rgbs"] = to_rgbs
    params["to_to_rgbs"] = to_to_rgbs
    return params


# --------------------------------------------------------------------------
# Forward (mirrors CIPSskippatchearly.forward)
# --------------------------------------------------------------------------
def cips_forward(params, coords, latent_list, *, return_latents=False,
                 truncation=1.0, truncation_latent=None, input_is_latent=False,
                 early_exit=False, second_exit=False, tn=None):
    latent = latent_list[0]
    if truncation < 1:
        latent = truncation_latent + truncation * (latent - truncation_latent)
    if not input_is_latent:
        latent = style_mlp(latent, params["style_wT"], params["style_b"])
    latent = latent.astype(jnp.float32)

    B, _, H, W = coords.shape
    feat, layer_ws, layer_bs, layer_meta = _prepare(
        params, coords, latent, early_exit, second_exit)

    rgb = cips_fused(feat, layer_ws, layer_bs, layer_meta, tn=tn)
    rgb = rgb[:, :3, :].reshape(B, 3, H, W)
    if return_latents:
        return rgb, latent
    return rgb, None


# --------------------------------------------------------------------------
# Pure-JAX reference for the fused chain (same prologue, same bf16 rounding).
# --------------------------------------------------------------------------
def _ref_chain(feat, layer_ws, layer_bs, layer_meta):
    B, _, N = feat.shape
    x = feat
    rgb = jnp.zeros((B, 8, N), jnp.float32)
    for w, b, (n_conv, has_rgb) in zip(layer_ws, layer_bs, layer_meta):
        out = jnp.einsum("bij,bjn->bin", w, x,
                         preferred_element_type=jnp.float32) + b[None]
        if n_conv > 0:
            h = out[:, :n_conv]
            h = jnp.where(h >= 0.0, h, 0.2 * h) * _SQRT2
            x = h.astype(jnp.bfloat16)
        if has_rgb:
            rgb = rgb + out[:, n_conv:n_conv + 8]
    return rgb[:, :3]


# --------------------------------------------------------------------------
if __name__ == "__main__":
    key = jax.random.PRNGKey(0)
    kp, kl = jax.random.split(key, 2)

    # Small shapes consistent with the module structure
    B, H, W = 2, 16, 16
    hidden_size = 32
    style_dim = 32
    n_mlp = 8
    lr_mlp = 0.01
    size = 16        # log_size=4 -> n_intermediate=3 blocks
    base = 64        # scaled-down channels dict (base=512 == original module)

    params = init_params(kp, size=size, hidden_size=hidden_size,
                         style_dim=style_dim, n_mlp=n_mlp, lr_mlp=lr_mlp,
                         channel_multiplier=2, base=base)

    # coords: NCHW with C=2 normalized (x, y) pixel coordinates
    ys, xs = jnp.meshgrid(jnp.linspace(-1.0, 1.0, H),
                          jnp.linspace(-1.0, 1.0, W), indexing="ij")
    coords = jnp.broadcast_to(jnp.stack([xs, ys], axis=0)[None],
                              (B, 2, H, W)).astype(jnp.float32)
    latent = [jax.random.normal(kl, (B, style_dim), jnp.float32)]

    rgb, _ = cips_forward(params, coords, latent)
    rgb = jax.block_until_ready(rgb)

    # Correctness vs. a pure-JAX reference using the identical prologue.
    lat_w = style_mlp(latent[0], params["style_wT"], params["style_b"])
    feat, lws, lbs, meta = _prepare(params, coords, lat_w, False, False)
    rgb_ref = _ref_chain(feat, lws, lbs, meta).reshape(B, 3, H, W)

    assert rgb.shape == (B, 3, H, W), rgb.shape
    assert bool(jnp.all(jnp.isfinite(rgb)))
    assert bool(jnp.allclose(rgb, rgb_ref, atol=5e-2, rtol=5e-2)), \
        float(jnp.max(jnp.abs(rgb - rgb_ref)))
    print("KERNEL_OK")
</pallas_src>

<mosaic_0001>
module attributes {stable_mosaic.version = 11 : i64} {
  func.func @_style_mlp_kernel(%arg0: memref<8x128xf32, #tpu.memory_space<vmem>>, %arg1: memref<8x128x128xbf16, #tpu.memory_space<vmem>>, %arg2: memref<8x1x128xf32, #tpu.memory_space<vmem>>, %arg3: memref<8x128xf32, #tpu.memory_space<vmem>>) attributes {dimension_semantics = [], scalar_prefetch = 0 : i64, scratch_operands = 0 : i64, tpu.core_type = #tpu.core_type<tc>} {
    %c0 = arith.constant 0 : index
    %c0_0 = arith.constant 0 : index
    %0 = vector.load %arg0[%c0, %c0_0] : memref<8x128xf32, #tpu.memory_space<vmem>>, vector<8x128xf32>
    %1 = arith.mulf %0, %0 : vector<8x128xf32>
    %cst = arith.constant dense<0.000000e+00> : vector<8xf32>
    %2 = vector.multi_reduction <add>, %1, %cst [1] : vector<8x128xf32> to vector<8xf32>
    %3 = vector.shape_cast %2 : vector<8xf32> to vector<8x1xf32>
    %cst_1 = arith.constant 3.125000e-02 : f32
    %4 = vector.broadcast %cst_1 : f32 to vector<8x1xf32>
    %5 = arith.mulf %3, %4 : vector<8x1xf32>
    %cst_2 = arith.constant 9.99999993E-9 : f32
    %6 = vector.broadcast %cst_2 : f32 to vector<8x1xf32>
    %7 = arith.addf %5, %6 : vector<8x1xf32>
    %8 = math.rsqrt %7 : vector<8x1xf32>
    %9 = vector.broadcast %8 : vector<8x1xf32> to vector<8x128xf32>
    %10 = arith.mulf %0, %9 : vector<8x128xf32>
    %11 = arith.truncf %10 : vector<8x128xf32> to vector<8x128xbf16>
    %c0_3 = arith.constant 0 : index
    %c0_4 = arith.constant 0 : index
    %c0_5 = arith.constant 0 : index
    %12 = vector.load %arg1[%c0_3, %c0_4, %c0_5] : memref<8x128x128xbf16, #tpu.memory_space<vmem>>, vector<1x128x128xbf16>
    %13 = vector.shape_cast %12 : vector<1x128x128xbf16> to vector<128x128xbf16>
    %cst_6 = arith.constant dense<0.000000e+00> : vector<8x128xf32>
    %14 = tpu.matmul %11, %13, %cst_6 {dimension_numbers = #tpu.dot_dimension_numbers<[1], [0], [0], [1], [0, 0, 1, 1], [], []>} : vector<8x128xbf16>, vector<128x128xbf16>, vector<8x128xf32> -> vector<8x128xf32>
    %c0_7 = arith.constant 0 : index
    %c0_8 = arith.constant 0 : index
    %c0_9 = arith.constant 0 : index
    %15 = vector.load %arg2[%c0_7, %c0_8, %c0_9] : memref<8x1x128xf32, #tpu.memory_space<vmem>>, vector<1x1x128xf32>
    %16 = vector.shape_cast %15 : vector<1x1x128xf32> to vector<1x128xf32>
    %17 = vector.broadcast %16 : vector<1x128xf32> to vector<8x128xf32>
    %18 = arith.addf %14, %17 : vector<8x128xf32>
    %cst_10 = arith.constant 0.000000e+00 : f32
    %19 = vector.broadcast %cst_10 : f32 to vector<8x128xf32>
    %20 = arith.cmpf oge, %18, %19 : vector<8x128xf32>
    %cst_11 = arith.constant 2.000000e-01 : f32
    %21 = vector.broadcast %cst_11 : f32 to vector<8x128xf32>
    %22 = arith.mulf %21, %18 : vector<8x128xf32>
    %23 = arith.select %20, %18, %22 : vector<8x128xi1>, vector<8x128xf32>
    %cst_12 = arith.constant 1.41421354 : f32
    %24 = vector.broadcast %cst_12 : f32 to vector<8x128xf32>
    %25 = arith.mulf %23, %24 : vector<8x128xf32>
    %26 = arith.truncf %25 : vector<8x128xf32> to vector<8x128xbf16>
    %c1 = arith.constant 1 : index
    %c0_13 = arith.constant 0 : index
    %c0_14 = arith.constant 0 : index
    %27 = vector.load %arg1[%c1, %c0_13, %c0_14] : memref<8x128x128xbf16, #tpu.memory_space<vmem>>, vector<1x128x128xbf16>
    %28 = vector.shape_cast %27 : vector<1x128x128xbf16> to vector<128x128xbf16>
    %cst_15 = arith.constant dense<0.000000e+00> : vector<8x128xf32>
    %29 = tpu.matmul %26, %28, %cst_15 {dimension_numbers = #tpu.dot_dimension_numbers<[1], [0], [0], [1], [0, 0, 1, 1], [], []>} : vector<8x128xbf16>, vector<128x128xbf16>, vector<8x128xf32> -> vector<8x128xf32>
    %c1_16 = arith.constant 1 : index
    %c0_17 = arith.constant 0 : index
    %c0_18 = arith.constant 0 : index
    %30 = vector.load %arg2[%c1_16, %c0_17, %c0_18] : memref<8x1x128xf32, #tpu.memory_space<vmem>>, vector<1x1x128xf32>
    %31 = vector.shape_cast %30 : vector<1x1x128xf32> to vector<1x128xf32>
    %32 = vector.broadcast %31 : vector<1x128xf32> to vector<8x128xf32>
    %33 = arith.addf %29, %32 : vector<8x128xf32>
    %cst_19 = arith.constant 0.000000e+00 : f32
    %34 = vector.broadcast %cst_19 : f32 to vector<8x128xf32>
    %35 = arith.cmpf oge, %33, %34 : vector<8x128xf32>
    %cst_20 = arith.constant 2.000000e-01 : f32
    %36 = vector.broadcast %cst_20 : f32 to vector<8x128xf32>
    %37 = arith.mulf %36, %33 : vector<8x128xf32>
    %38 = arith.select %35, %33, %37 : vector<8x128xi1>, vector<8x128xf32>
    %cst_21 = arith.constant 1.41421354 : f32
    %39 = vector.broadcast %cst_21 : f32 to vector<8x128xf32>
    %40 = arith.mulf %38, %39 : vector<8x128xf32>
    %41 = arith.truncf %40 : vector<8x128xf32> to vector<8x128xbf16>
    %c2 = arith.constant 2 : index
    %c0_22 = arith.constant 0 : index
    %c0_23 = arith.constant 0 : index
    %42 = vector.load %arg1[%c2, %c0_22, %c0_23] : memref<8x128x128xbf16, #tpu.memory_space<vmem>>, vector<1x128x128xbf16>
    %43 = vector.shape_cast %42 : vector<1x128x128xbf16> to vector<128x128xbf16>
    %cst_24 = arith.constant dense<0.000000e+00> : vector<8x128xf32>
    %44 = tpu.matmul %41, %43, %cst_24 {dimension_numbers = #tpu.dot_dimension_numbers<[1], [0], [0], [1], [0, 0, 1, 1], [], []>} : vector<8x128xbf16>, vector<128x128xbf16>, vector<8x128xf32> -> vector<8x128xf32>
    %c2_25 = arith.constant 2 : index
    %c0_26 = arith.constant 0 : index
    %c0_27 = arith.constant 0 : index
    %45 = vector.load %arg2[%c2_25, %c0_26, %c0_27] : memref<8x1x128xf32, #tpu.memory_space<vmem>>, vector<1x1x128xf32>
    %46 = vector.shape_cast %45 : vector<1x1x128xf32> to vector<1x128xf32>
    %47 = vector.broadcast %46 : vector<1x128xf32> to vector<8x128xf32>
    %48 = arith.addf %44, %47 : vector<8x128xf32>
    %cst_28 = arith.constant 0.000000e+00 : f32
    %49 = vector.broadcast %cst_28 : f32 to vector<8x128xf32>
    %50 = arith.cmpf oge, %48, %49 : vector<8x128xf32>
    %cst_29 = arith.constant 2.000000e-01 : f32
    %51 = vector.broadcast %cst_29 : f32 to vector<8x128xf32>
    %52 = arith.mulf %51, %48 : vector<8x128xf32>
    %53 = arith.select %50, %48, %52 : vector<8x128xi1>, vector<8x128xf32>
    %cst_30 = arith.constant 1.41421354 : f32
    %54 = vector.broadcast %cst_30 : f32 to vector<8x128xf32>
    %55 = arith.mulf %53, %54 : vector<8x128xf32>
    %56 = arith.truncf %55 : vector<8x128xf32> to vector<8x128xbf16>
    %c3 = arith.constant 3 : index
    %c0_31 = arith.constant 0 : index
    %c0_32 = arith.constant 0 : index
    %57 = vector.load %arg1[%c3, %c0_31, %c0_32] : memref<8x128x128xbf16, #tpu.memory_space<vmem>>, vector<1x128x128xbf16>
    %58 = vector.shape_cast %57 : vector<1x128x128xbf16> to vector<128x128xbf16>
    %cst_33 = arith.constant dense<0.000000e+00> : vector<8x128xf32>
    %59 = tpu.matmul %56, %58, %cst_33 {dimension_numbers = #tpu.dot_dimension_numbers<[1], [0], [0], [1], [0, 0, 1, 1], [], []>} : vector<8x128xbf16>, vector<128x128xbf16>, vector<8x128xf32> -> vector<8x128xf32>
    %c3_34 = arith.constant 3 : index
    %c0_35 = arith.constant 0 : index
    %c0_36 = arith.constant 0 : index
    %60 = vector.load %arg2[%c3_34, %c0_35, %c0_36] : memref<8x1x128xf32, #tpu.memory_space<vmem>>, vector<1x1x128xf32>
    %61 = vector.shape_cast %60 : vector<1x1x128xf32> to vector<1x128xf32>
    %62 = vector.broadcast %61 : vector<1x128xf32> to vector<8x128xf32>
    %63 = arith.addf %59, %62 : vector<8x128xf32>
    %cst_37 = arith.constant 0.000000e+00 : f32
    %64 = vector.broadcast %cst_37 : f32 to vector<8x128xf32>
    %65 = arith.cmpf oge, %63, %64 : vector<8x128xf32>
    %cst_38 = arith.constant 2.000000e-01 : f32
    %66 = vector.broadcast %cst_38 : f32 to vector<8x128xf32>
    %67 = arith.mulf %66, %63 : vector<8x128xf32>
    %68 = arith.select %65, %63, %67 : vector<8x128xi1>, vector<8x128xf32>
    %cst_39 = arith.constant 1.41421354 : f32
    %69 = vector.broadcast %cst_39 : f32 to vector<8x128xf32>
    %70 = arith.mulf %68, %69 : vector<8x128xf32>
    %71 = arith.truncf %70 : vector<8x128xf32> to vector<8x128xbf16>
    %c4 = arith.constant 4 : index
    %c0_40 = arith.constant 0 : index
    %c0_41 = arith.constant 0 : index
    %72 = vector.load %arg1[%c4, %c0_40, %c0_41] : memref<8x128x128xbf16, #tpu.memory_space<vmem>>, vector<1x128x128xbf16>
    %73 = vector.shape_cast %72 : vector<1x128x128xbf16> to vector<128x128xbf16>
    %cst_42 = arith.constant dense<0.000000e+00> : vector<8x128xf32>
    %74 = tpu.matmul %71, %73, %cst_42 {dimension_numbers = #tpu.dot_dimension_numbers<[1], [0], [0], [1], [0, 0, 1, 1], [], []>} : vector<8x128xbf16>, vector<128x128xbf16>, vector<8x128xf32> -> vector<8x128xf32>
    %c4_43 = arith.constant 4 : index
    %c0_44 = arith.constant 0 : index
    %c0_45 = arith.constant 0 : index
    %75 = vector.load %arg2[%c4_43, %c0_44, %c0_45] : memref<8x1x128xf32, #tpu.memory_space<vmem>>, vector<1x1x128xf32>
    %76 = vector.shape_cast %75 : vector<1x1x128xf32> to vector<1x128xf32>
    %77 = vector.broadcast %76 : vector<1x128xf32> to vector<8x128xf32>
    %78 = arith.addf %74, %77 : vector<8x128xf32>
    %cst_46 = arith.constant 0.000000e+00 : f32
    %79 = vector.broadcast %cst_46 : f32 to vector<8x128xf32>
    %80 = arith.cmpf oge, %78, %79 : vector<8x128xf32>
    %cst_47 = arith.constant 2.000000e-01 : f32
    %81 = vector.broadcast %cst_47 : f32 to vector<8x128xf32>
    %82 = arith.mulf %81, %78 : vector<8x128xf32>
    %83 = arith.select %80, %78, %82 : vector<8x128xi1>, vector<8x128xf32>
    %cst_48 = arith.constant 1.41421354 : f32
    %84 = vector.broadcast %cst_48 : f32 to vector<8x128xf32>
    %85 = arith.mulf %83, %84 : vector<8x128xf32>
    %86 = arith.truncf %85 : vector<8x128xf32> to vector<8x128xbf16>
    %c5 = arith.constant 5 : index
    %c0_49 = arith.constant 0 : index
    %c0_50 = arith.constant 0 : index
    %87 = vector.load %arg1[%c5, %c0_49, %c0_50] : memref<8x128x128xbf16, #tpu.memory_space<vmem>>, vector<1x128x128xbf16>
    %88 = vector.shape_cast %87 : vector<1x128x128xbf16> to vector<128x128xbf16>
    %cst_51 = arith.constant dense<0.000000e+00> : vector<8x128xf32>
    %89 = tpu.matmul %86, %88, %cst_51 {dimension_numbers = #tpu.dot_dimension_numbers<[1], [0], [0], [1], [0, 0, 1, 1], [], []>} : vector<8x128xbf16>, vector<128x128xbf16>, vector<8x128xf32> -> vector<8x128xf32>
    %c5_52 = arith.constant 5 : index
    %c0_53 = arith.constant 0 : index
    %c0_54 = arith.constant 0 : index
    %90 = vector.load %arg2[%c5_52, %c0_53, %c0_54] : memref<8x1x128xf32, #tpu.memory_space<vmem>>, vector<1x1x128xf32>
    %91 = vector.shape_cast %90 : vector<1x1x128xf32> to vector<1x128xf32>
    %92 = vector.broadcast %91 : vector<1x128xf32> to vector<8x128xf32>
    %93 = arith.addf %89, %92 : vector<8x128xf32>
    %cst_55 = arith.constant 0.000000e+00 : f32
    %94 = vector.broadcast %cst_55 : f32 to vector<8x128xf32>
    %95 = arith.cmpf oge, %93, %94 : vector<8x128xf32>
    %cst_56 = arith.constant 2.000000e-01 : f32
    %96 = vector.broadcast %cst_56 : f32 to vector<8x128xf32>
    %97 = arith.mulf %96, %93 : vector<8x128xf32>
    %98 = arith.select %95, %93, %97 : vector<8x128xi1>, vector<8x128xf32>
    %cst_57 = arith.constant 1.41421354 : f32
    %99 = vector.broadcast %cst_57 : f32 to vector<8x128xf32>
    %100 = arith.mulf %98, %99 : vector<8x128xf32>
    %101 = arith.truncf %100 : vector<8x128xf32> to vector<8x128xbf16>
    %c6 = arith.constant 6 : index
    %c0_58 = arith.constant 0 : index
    %c0_59 = arith.constant 0 : index
    %102 = vector.load %arg1[%c6, %c0_58, %c0_59] : memref<8x128x128xbf16, #tpu.memory_space<vmem>>, vector<1x128x128xbf16>
    %103 = vector.shape_cast %102 : vector<1x128x128xbf16> to vector<128x128xbf16>
    %cst_60 = arith.constant dense<0.000000e+00> : vector<8x128xf32>
    %104 = tpu.matmul %101, %103, %cst_60 {dimension_numbers = #tpu.dot_dimension_numbers<[1], [0], [0], [1], [0, 0, 1, 1], [], []>} : vector<8x128xbf16>, vector<128x128xbf16>, vector<8x128xf32> -> vector<8x128xf32>
    %c6_61 = arith.constant 6 : index
    %c0_62 = arith.constant 0 : index
    %c0_63 = arith.constant 0 : index
    %105 = vector.load %arg2[%c6_61, %c0_62, %c0_63] : memref<8x1x128xf32, #tpu.memory_space<vmem>>, vector<1x1x128xf32>
    %106 = vector.shape_cast %105 : vector<1x1x128xf32> to vector<1x128xf32>
    %107 = vector.broadcast %106 : vector<1x128xf32> to vector<8x128xf32>
    %108 = arith.addf %104, %107 : vector<8x128xf32>
    %cst_64 = arith.constant 0.000000e+00 : f32
    %109 = vector.broadcast %cst_64 : f32 to vector<8x128xf32>
    %110 = arith.cmpf oge, %108, %109 : vector<8x128xf32>
    %cst_65 = arith.constant 2.000000e-01 : f32
    %111 = vector.broadcast %cst_65 : f32 to vector<8x128xf32>
    %112 = arith.mulf %111, %108 : vector<8x128xf32>
    %113 = arith.select %110, %108, %112 : vector<8x128xi1>, vector<8x128xf32>
    %cst_66 = arith.constant 1.41421354 : f32
    %114 = vector.broadcast %cst_66 : f32 to vector<8x128xf32>
    %115 = arith.mulf %113, %114 : vector<8x128xf32>
    %116 = arith.truncf %115 : vector<8x128xf32> to vector<8x128xbf16>
    %c7 = arith.constant 7 : index
    %c0_67 = arith.constant 0 : index
    %c0_68 = arith.constant 0 : index
    %117 = vector.load %arg1[%c7, %c0_67, %c0_68] : memref<8x128x128xbf16, #tpu.memory_space<vmem>>, vector<1x128x128xbf16>
    %118 = vector.shape_cast %117 : vector<1x128x128xbf16> to vector<128x128xbf16>
    %cst_69 = arith.constant dense<0.000000e+00> : vector<8x128xf32>
    %119 = tpu.matmul %116, %118, %cst_69 {dimension_numbers = #tpu.dot_dimension_numbers<[1], [0], [0], [1], [0, 0, 1, 1], [], []>} : vector<8x128xbf16>, vector<128x128xbf16>, vector<8x128xf32> -> vector<8x128xf32>
    %c7_70 = arith.constant 7 : index
    %c0_71 = arith.constant 0 : index
    %c0_72 = arith.constant 0 : index
    %120 = vector.load %arg2[%c7_70, %c0_71, %c0_72] : memref<8x1x128xf32, #tpu.memory_space<vmem>>, vector<1x1x128xf32>
    %121 = vector.shape_cast %120 : vector<1x1x128xf32> to vector<1x128xf32>
    %122 = vector.broadcast %121 : vector<1x128xf32> to vector<8x128xf32>
    %123 = arith.addf %119, %122 : vector<8x128xf32>
    %cst_73 = arith.constant 0.000000e+00 : f32
    %124 = vector.broadcast %cst_73 : f32 to vector<8x128xf32>
    %125 = arith.cmpf oge, %123, %124 : vector<8x128xf32>
    %cst_74 = arith.constant 2.000000e-01 : f32
    %126 = vector.broadcast %cst_74 : f32 to vector<8x128xf32>
    %127 = arith.mulf %126, %123 : vector<8x128xf32>
    %128 = arith.select %125, %123, %127 : vector<8x128xi1>, vector<8x128xf32>
    %cst_75 = arith.constant 1.41421354 : f32
    %129 = vector.broadcast %cst_75 : f32 to vector<8x128xf32>
    %130 = arith.mulf %128, %129 : vector<8x128xf32>
    %c0_76 = arith.constant 0 : index
    %c0_77 = arith.constant 0 : index
    %131 = vector.load %arg3[%c0_76, %c0_77] : memref<8x128xf32, #tpu.memory_space<vmem>>, vector<8x128xf32>
    tpu.vector_store %arg3[%c0_76, %c0_77], %130 {strides = array<i32>} : memref<8x128xf32, #tpu.memory_space<vmem>>, vector<8x128xf32>,
    return
  }
}

</mosaic_0001>

<bundles_post_ra>
// kernel: tpu_custom_call.1
= control target key start
LH: loop header
LB: loop body
LE: loop exit
PB: predicated region body
PF: predicated region fallthrough
CT: control target
= control target key end

     0   :  { %8 = vsyncpa [#allocation3], 0  ;;  %s1278_s0 = inlined_call_operand.hbm [shape: f32[8,128], index: 0, kind: input, shape index: {}]   ;;  %s1279_s1 = inlined_call_operand.hbm [shape: bf16[8,128,128], index: 1, kind: input, shape index: {}]   ;;  %s1280_s2 = inlined_call_operand.hbm [shape: f32[8,1,128], index: 2, kind: input, shape index: {}]   ;;  %s1281_s3 = inlined_call_operand.hbm [shape: f32[8,128], index: 3, kind: output, shape index: {}]  }
   0x1   :  { %9 = vsyncpa [#allocation6], 0  ;;  %s26_s14 = sshll.u32 %s1279_s1, 4  ;;  %s27_s14 = int_to_ptr.hbm [resolvable:$true] %s26_s14 }
   0x2   :  { %10 = vsyncpa [#allocation4], 0  ;;  %s1238_s15 = smov [#allocation5]   ;;  %s16_s19 = sshll.u32 %s1278_s0, 4  ;;  %s17_s19 = int_to_ptr.hbm [resolvable:$true] %s16_s19 }
   0x3   :  { %s28_s16 = sshll.u32 %s1238_s15, 4  ;;  %s1239_s20 = smov 64   ;;  %s29_s16 = int_to_ptr.vmem [resolvable:$true] %s28_s16 }
   0x4   :  { %s1240_s21 = smov 4   ;;  %s1241_s22 = smov [#allocation2]  }
   0x5   :  { %34 = dma.hbm_to_vmem [thread:$0]  %s27_s14, 8192, %s29_s16, [#allocation6], %s1239_s20, %s1239_s20, %s1240_s21  }
   0x6   :  { %s18_s23 = sshll.u32 %s1241_s22, 4  ;;  %s39_s26 = sshll.u32 %s1280_s2, 4  ;;  %s19_s23 = int_to_ptr.vmem [resolvable:$true] %s18_s23  ;;  %s40_s26 = int_to_ptr.hbm [resolvable:$true] %s39_s26 }
   0x7   :  { %21 = dma.hbm_to_vmem [thread:$0]  %s17_s19, 128, %s19_s23, [#allocation3]  }
   0x8   :  { %s1242_s1 = smov [#allocation7]   ;;  %s1243_s28 = smov 16  }
   0x9   :  { %s41_s27 = sshll.u32 %s1242_s1, 4  ;;  %s1244_s29 = smov 1   ;;  %s42_s27 = int_to_ptr.vmem [resolvable:$true] %s41_s27 }
   0xa   :  { %47 = dma.hbm_to_vmem [thread:$0]  %s40_s26, 128, %s42_s27, [#allocation6], %s1243_s28, %s1243_s28, %s1244_s29  }
   0xb   :  { %1232 = dma.done.wait [#allocation3], 128  }
   0xc   :  { %1233 = vsyncadd [#allocation3], 4294967168 }
   0xd   :  { %1234 = dma.done.wait [#allocation6], 8320  }
   0xe   :  { %1235 = vsyncadd [#allocation6], 4294958976  ;;  %v60_v0 = vld [vmem:[#allocation2] sm:$0xff]  ;;  %v1060_v3 = vld [vmem:[#allocation5 + $0x30] sm:$0xff]  ;;  %s1245_s0 = smov [#allocation8]   ;;  %s787_s5 = sshll.u32 %s1281_s3, 4  ;;  %s788_s5 = int_to_ptr.hbm [resolvable:$true] %s787_s5 }
   0xf   :  { %v1061_v1 = vld [vmem:[#allocation5 + $0x38] sm:$0xff]  ;;  %v61_v2 = vmul.f32 %v60_v0, %v60_v0  ;;  %v1059_v4 = vld [vmem:[#allocation5 + $0x28] sm:$0xff]  ;;  %v1058_v5 = vld [vmem:[#allocation5 + $0x20] sm:$0xff]  ;;  %s785_s2 = sshll.u32 %s1245_s0, 4  ;;  %s786_s2 = int_to_ptr.vmem [resolvable:$true] %s785_s2 }
  0x10   :  { %146 = vmatpush.bf16.msra.mxu0 %v1061_v1  ;;  %v1057_v6 = vld [vmem:[#allocation5 + $0x18] sm:$0xff]  ;;  %v1056_v7 = vld [vmem:[#allocation5 + $0x10] sm:$0xff]  ;;  %v1055_v8 = vld [vmem:[#allocation5 + $0x8] sm:$0xff] }
  0x11   :  { %62 = vadd.xlane.f32.xlu0 %v61_v2  ;;  %v1054_v9 = vld [vmem:[#allocation5] sm:$0xff]  ;;  %v1069_v10 = vld [vmem:[#allocation5 + $0x78] sm:$0xff]  ;;  %v1068_v11 = vld [vmem:[#allocation5 + $0x70] sm:$0xff] }
  0x12   :  { %234 = vmatpush.bf16.msra.mxu1 %v1069_v10  ;;  %v1067_v14 = vld [vmem:[#allocation5 + $0x68] sm:$0xff]  ;;  %v1066_v16 = vld [vmem:[#allocation5 + $0x60] sm:$0xff]  ;;  %v1065_v17 = vld [vmem:[#allocation5 + $0x58] sm:$0xff] }
  0x13   :  { %v1064_v20 = vld [vmem:[#allocation5 + $0x50] sm:$0xff]  ;;  %v1063_v28 = vld [vmem:[#allocation5 + $0x48] sm:$0xff]  ;;  %v1062_v29 = vld [vmem:[#allocation5 + $0x40] sm:$0xff] }
  0x14   :  { %147 = vmatpush.bf16.msra.mxu0 %v1060_v3  ;;  %v1077_v30 = vld [vmem:[#allocation5 + $0xb8] sm:$0xff]  ;;  %v1076_v31 = vld [vmem:[#allocation5 + $0xb0] sm:$0xff]  ;;  %v1075_v32 = vld [vmem:[#allocation5 + $0xa8] sm:$0xff] }
  0x15   :  { %322 = vmatpush.bf16.msra.mxu2 %v1077_v30  ;;  %v1074_v33 = vld [vmem:[#allocation5 + $0xa0] sm:$0xff]  ;;  %v1073_v34 = vld [vmem:[#allocation5 + $0x98] sm:$0xff]  ;;  %v1072_v35 = vld [vmem:[#allocation5 + $0x90] sm:$0xff] }
  0x16   :  { %235 = vmatpush.bf16.msra.mxu1 %v1068_v11  ;;  %v1126_v36 = vld [vmem:[#allocation7] ss:$0 sm:$0xff]  ;;  %v1071_v44 = vld [vmem:[#allocation5 + $0x88] sm:$0xff]  ;;  %v1085_v46 = vld [vmem:[#allocation5 + $0xf8] sm:$0xff] }
  0x17   :  { %v1070_v45 = vld [vmem:[#allocation5 + $0x80] sm:$0xff]  ;;  %410 = vmatpush.bf16.msra.mxu3 %v1085_v46  ;;  %v1084_v47 = vld [vmem:[#allocation5 + $0xf0] sm:$0xff]  ;;  %v1083_v48 = vld [vmem:[#allocation5 + $0xe8] sm:$0xff] }
  0x18   :  { %148 = vmatpush.bf16.msra.mxu0 %v1059_v4  ;;  %v1082_v49 = vld [vmem:[#allocation5 + $0xe0] sm:$0xff]  ;;  %v1081_v50 = vld [vmem:[#allocation5 + $0xd8] sm:$0xff]  ;;  %v1080_v51 = vld [vmem:[#allocation5 + $0xd0] sm:$0xff] }
  0x19   :  { %323 = vmatpush.bf16.msra.mxu2 %v1076_v31  ;;  %v1127_v52 = vld [vmem:[#allocation7 + $0x1] ss:$0 sm:$0xff]  ;;  %v1079_v60 = vld [vmem:[#allocation5 + $0xc8] sm:$0xff]  ;;  %v1093_v62 = vld [vmem:[#allocation5 + $0x138] sm:$0xff] }
  0x1a   :  { %236 = vmatpush.bf16.msra.mxu1 %v1067_v14  ;;  %v1078_v61 = vld [vmem:[#allocation5 + $0xc0] sm:$0xff]  ;;  %v1092_v63 = vld [vmem:[#allocation5 + $0x130] sm:$0xff]  ;;  %v1089_v2 = vld [vmem:[#allocation5 + $0x118] sm:$0xff] }
  0x1b   :  { %411 = vmatpush.bf16.msra.mxu3 %v1084_v47  ;;  %v1090_v1 = vld [vmem:[#allocation5 + $0x120] sm:$0xff]  ;;  %v1088_v3 = vld [vmem:[#allocation5 + $0x110] sm:$0xff]  ;;  %v1101_v14 = vld [vmem:[#allocation5 + $0x178] sm:$0xff] }
  0x1c   :  { %149 = vmatpush.bf16.msra.mxu0 %v1058_v5  ;;  %v1128_v4 = vld [vmem:[#allocation7 + $0x2] ss:$0 sm:$0xff]  ;;  %v1109_v30 = vld [vmem:[#allocation5 + $0x1b8] sm:$0xff]  ;;  %v1108_v31 = vld [vmem:[#allocation5 + $0x1b0] sm:$0xff] }
  0x1d   :  { %324 = vmatpush.bf16.msra.mxu2 %v1075_v32  ;;  %v1107_v32 = vld [vmem:[#allocation5 + $0x1a8] sm:$0xff]  ;;  %v1117_v46 = vld [vmem:[#allocation5 + $0x1f8] sm:$0xff]  ;;  %v1116_v47 = vld [vmem:[#allocation5 + $0x1f0] sm:$0xff] }
  0x1e   :  { %237 = vmatpush.bf16.msra.mxu1 %v1066_v16  ;;  %v1099_v16 = vld [vmem:[#allocation5 + $0x168] sm:$0xff] }
  0x1f   :  { %412 = vmatpush.bf16.msra.mxu3 %v1083_v48  ;;  %v1115_v48 = vld [vmem:[#allocation5 + $0x1e8] sm:$0xff] }
  0x20   :  { %150 = vmatpush.bf16.msra.mxu0 %v1057_v6 }
  0x21   :  { %325 = vmatpush.bf16.msra.mxu2 %v1074_v33  ;;  %v1106_v33 = vld [vmem:[#allocation5 + $0x1a0] sm:$0xff] }
  0x22   :  { %238 = vmatpush.bf16.msra.mxu1 %v1065_v17  ;;  %v1098_v17 = vld [vmem:[#allocation5 + $0x160] sm:$0xff] }
  0x23   :  { %413 = vmatpush.bf16.msra.mxu3 %v1082_v49  ;;  %v1114_v49 = vld [vmem:[#allocation5 + $0x1e0] sm:$0xff] }
  0x24   :  { %151 = vmatpush.bf16.msra.mxu0 %v1056_v7 }
  0x25   :  { %326 = vmatpush.bf16.msra.mxu2 %v1073_v34  ;;  %v1105_v34 = vld [vmem:[#allocation5 + $0x198] sm:$0xff] }
  0x26   :  { %239 = vmatpush.bf16.msra.mxu1 %v1064_v20  ;;  %v1129_v20 = vld [vmem:[#allocation7 + $0x3] ss:$0 sm:$0xff] }
  0x27   :  { %414 = vmatpush.bf16.msra.mxu3 %v1081_v50  ;;  %v1113_v50 = vld [vmem:[#allocation5 + $0x1d8] sm:$0xff] }
  0x28   :  { %152 = vmatpush.bf16.msra.mxu0 %v1055_v8 }
  0x29   :  { %327 = vmatpush.bf16.msra.mxu2 %v1072_v35  ;;  %v1104_v35 = vld [vmem:[#allocation5 + $0x190] sm:$0xff] }
  0x2a   :  { %240 = vmatpush.bf16.msra.mxu1 %v1063_v28  ;;  %v1095_v28 = vld [vmem:[#allocation5 + $0x148] sm:$0xff] }
  0x2b   :  { %415 = vmatpush.bf16.msra.mxu3 %v1080_v51  ;;  %v1112_v51 = vld [vmem:[#allocation5 + $0x1d0] sm:$0xff] }
  0x2c   :  { %153 = vmatpush.bf16.msra.mxu0 %v1054_v9 }
  0x2d   :  { %328 = vmatpush.bf16.msra.mxu2 %v1071_v44  ;;  %v1103_v44 = vld [vmem:[#allocation5 + $0x188] sm:$0xff] }
  0x2e   :  { %241 = vmatpush.bf16.msra.mxu1 %v1062_v29  ;;  %v1094_v29 = vld [vmem:[#allocation5 + $0x140] sm:$0xff] }
  0x2f   :  { %416 = vmatpush.bf16.msra.mxu3 %v1079_v60  ;;  %v1111_v60 = vld [vmem:[#allocation5 + $0x1c8] sm:$0xff] }
  0x30   :  { %498 = vmatpush.bf16.msrb.mxu0 %v1093_v62  ;;  %v1132_v62 = vld [vmem:[#allocation7 + $0x6] ss:$0 sm:$0xff] }
  0x31   :  { %329 = vmatpush.bf16.msra.mxu2 %v1070_v45  ;;  %v1102_v45 = vld [vmem:[#allocation5 + $0x180] sm:$0xff] }
  0x32   :  { %586 = vmatpush.bf16.msrb.mxu1 %v1101_v14 }
  0x33   :  { %417 = vmatpush.bf16.msra.mxu3 %v1078_v61  ;;  %v1110_v61 = vld [vmem:[#allocation5 + $0x1c0] sm:$0xff] }
  0x34   :  { %499 = vmatpush.bf16.msrb.mxu0 %v1092_v63 }
  0x35   :  { %674 = vmatpush.bf16.msrb.mxu2 %v1109_v30 }
  0x37   :  { %762 = vmatpush.bf16.msrb.mxu3 %v1117_v46 }
  0x39   :  { %675 = vmatpush.bf16.msrb.mxu2 %v1108_v31 }
  0x3b   :  { %763 = vmatpush.bf16.msrb.mxu3 %v1116_v47 }
  0x3d   :  { %676 = vmatpush.bf16.msrb.mxu2 %v1107_v32 }
  0x3f   :  { %764 = vmatpush.bf16.msrb.mxu3 %v1115_v48 }
  0x41   :  { %677 = vmatpush.bf16.msrb.mxu2 %v1106_v33 }
  0x43   :  { %765 = vmatpush.bf16.msrb.mxu3 %v1114_v49 }
  0x45   :  { %678 = vmatpush.bf16.msrb.mxu2 %v1105_v34 }
  0x47   :  { %766 = vmatpush.bf16.msrb.mxu3 %v1113_v50 }
  0x49   :  { %679 = vmatpush.bf16.msrb.mxu2 %v1104_v35 }
  0x4b   :  { %767 = vmatpush.bf16.msrb.mxu3 %v1112_v51 }
  0x4d   :  { %680 = vmatpush.bf16.msrb.mxu2 %v1103_v44 }
  0x4f   :  { %768 = vmatpush.bf16.msrb.mxu3 %v1111_v60 }
  0x51   :  { %681 = vmatpush.bf16.msrb.mxu2 %v1102_v45 }
  0x53   :  { %769 = vmatpush.bf16.msrb.mxu3 %v1110_v61 }
  0x84   :  { %v63_v12 = vpop.xlane.xlu0 %62 }
  0x85   :  { %v64_v13 = vmul.f32 0.03125, %v63_v12  ;;  %v1087_v12 = vld [vmem:[#allocation5 + $0x108] sm:$0xff] }
  0x87   :  { %v65_v15 = vadd.f32 1e-08, %v64_v13  ;;  %v1086_v13 = vld [vmem:[#allocation5 + $0x100] sm:$0xff] }
  0x89   :  { %1134 = vrsqrt.f32 %v65_v15  ;;  %vm72_vm1 = vweird.f32 %v65_v15 }
  0x8f   :  { %v1135_v18 = vpop.eup %1134 }
  0x90   :  { %v67_v19 = vmul.f32 %v1135_v18, %v65_v15  ;;  %vm73_vm0 = vweird.f32 %v1135_v18  ;;  %v1100_v15 = vld [vmem:[#allocation5 + $0x170] sm:$0xff] }
  0x91   :  { %vm74_vm2 = vmor %vm72_vm1, %vm73_vm0  ;;  %587 = vmatpush.bf16.msrb.mxu1 %v1100_v15 }
  0x92   :  { %v68_v21 = vmul.f32 %v1135_v18, %v67_v19  ;;  %v1096_v19 = vld [vmem:[#allocation5 + $0x150] sm:$0xff] }
  0x94   :  { %v69_v22 = vmul.f32 0.5, %v68_v21 }
  0x95   :  { %588 = vmatpush.bf16.msrb.mxu1 %v1099_v16 }
  0x96   :  { %v70_v23 = vsub.f32 1.5, %v69_v22 }
  0x98   :  { %v71_v24 = vmul.f32 %v1135_v18, %v70_v23 }
  0x99   :  { %589 = vmatpush.bf16.msrb.mxu1 %v1098_v17 }
  0x9a   :  { %v75_v25 = vsel %vm74_vm2, %v1135_v18, %v71_v24  ;;  %v1097_v18 = vld [vmem:[#allocation5 + $0x158] sm:$0xff] }
  0x9b   :  { %v76_v26 = vmul.f32 %v75_v25, %v60_v0  ;;  %v1091_v0 = vld [vmem:[#allocation5 + $0x128] sm:$0xff] }
  0x9c   :  { %500 = vmatpush.bf16.msrb.mxu0 %v1091_v0 }
  0x9d   :  { %v77_v27 = vpack.c.bf16 %v76_v26, %v76_v26  ;;  %590 = vmatpush.bf16.msrb.mxu1 %v1097_v18 }
  0x9f   :  { %154 = vmatmul.bf16.vlgmr.msra.gmra.mxu0 %v77_v27 }
  0xa0   :  { %501 = vmatpush.bf16.msrb.mxu0 %v1090_v1 }
  0xa1   :  { %591 = vmatpush.bf16.msrb.mxu1 %v1096_v19 }
  0xa4   :  { %502 = vmatpush.bf16.msrb.mxu0 %v1089_v2 }
  0xa5   :  { %592 = vmatpush.bf16.msrb.mxu1 %v1095_v28 }
  0xa8   :  { %503 = vmatpush.bf16.msrb.mxu0 %v1088_v3 }
  0xa9   :  { %593 = vmatpush.bf16.msrb.mxu1 %v1094_v29 }
  0xac   :  { %504 = vmatpush.bf16.msrb.mxu0 %v1087_v12 }
  0xb0   :  { %505 = vmatpush.bf16.msrb.mxu0 %v1086_v13 }
 0x11c   :  { %v155_v37 = vpop.f32.mrf.mxu0 }
 0x11d   :  { %v156_v38 = vadd.f32 %v1126_v36, %v155_v37  ;;  %v1130_v36 = vld [vmem:[#allocation7 + $0x4] ss:$0 sm:$0xff] }
 0x11f   :  { %v160_v39 = vmul.f32 0.2, %v156_v38  ;;  %vm159_vm3 = vcmp.ge.f32.partialorder %v156_v38, 0.0 }
 0x121   :  { %v161_v40 = vsel %vm159_vm3, %v156_v38, %v160_v39 }
 0x122   :  { %v162_v41 = vmul.f32 1.4142135, %v161_v40 }
 0x124   :  { %v157_v42 = vpop.f32.mrf.mxu0  ;;  %v163_v43 = vpack.c.bf16 %v162_v41, %v162_v41 }
 0x126   :  { %242 = vmatmul.bf16.vlgmr.msra.gmra.mxu1 %v163_v43 }
 0x1a3   :  { %v243_v53 = vpop.f32.mrf.mxu1 }
 0x1a4   :  { %v244_v54 = vadd.f32 %v1127_v52, %v243_v53  ;;  %v1131_v52 = vld [vmem:[#allocation7 + $0x5] ss:$0 sm:$0xff] }
 0x1a6   :  { %v248_v55 = vmul.f32 0.2, %v244_v54  ;;  %vm247_vm4 = vcmp.ge.f32.partialorder %v244_v54, 0.0 }
 0x1a8   :  { %v249_v56 = vsel %vm247_vm4, %v244_v54, %v248_v55 }
 0x1a9   :  { %v250_v57 = vmul.f32 1.4142135, %v249_v56 }
 0x1ab   :  { %v245_v58 = vpop.f32.mrf.mxu1  ;;  %v251_v59 = vpack.c.bf16 %v250_v57, %v250_v57 }
 0x1ad   :  { %330 = vmatmul.bf16.vlgmr.msra.gmra.mxu2 %v251_v59 }
 0x230   :  { %v331_v5 = vpop.f32.mrf.mxu2 }
 0x231   :  { %v332_v6 = vadd.f32 %v1128_v4, %v331_v5 }
 0x233   :  { %v336_v7 = vmul.f32 0.2, %v332_v6  ;;  %vm335_vm5 = vcmp.ge.f32.partialorder %v332_v6, 0.0 }
 0x235   :  { %v337_v8 = vsel %vm335_vm5, %v332_v6, %v336_v7  ;;  %v1133_v6 = vld [vmem:[#allocation7 + $0x7] ss:$0 sm:$0xff] }
 0x236   :  { %v338_v9 = vmul.f32 1.4142135, %v337_v8 }
 0x238   :  { %v333_v10 = vpop.f32.mrf.mxu2  ;;  %v339_v11 = vpack.c.bf16 %v338_v9, %v338_v9 }
 0x23a   :  { %418 = vmatmul.bf16.vlgmr.msra.gmra.mxu3 %v339_v11 }
 0x2bd   :  { %v419_v21 = vpop.f32.mrf.mxu3 }
 0x2be   :  { %v420_v22 = vadd.f32 %v1129_v20, %v419_v21 }
 0x2c0   :  { %vm423_vm6 = vcmp.ge.f32.partialorder %v420_v22, 0.0  ;;  %v424_v23 = vmul.f32 0.2, %v420_v22 }
 0x2c2   :  { %v425_v24 = vsel %vm423_vm6, %v420_v22, %v424_v23 }
 0x2c3   :  { %v426_v25 = vmul.f32 1.4142135, %v425_v24 }
 0x2c5   :  { %v421_v26 = vpop.f32.mrf.mxu3  ;;  %v427_v27 = vpack.c.bf16 %v426_v25, %v426_v25 }
 0x2c7   :  { %506 = vmatmul.bf16.vlgmr.msrb.gmra.mxu0 %v427_v27 }
 0x344   :  { %v507_v37 = vpop.f32.mrf.mxu0 }
 0x345   :  { %v508_v38 = vadd.f32 %v1130_v36, %v507_v37 }
 0x347   :  { %vm511_vm7 = vcmp.ge.f32.partialorder %v508_v38, 0.0  ;;  %v512_v39 = vmul.f32 0.2, %v508_v38 }
 0x349   :  { %v513_v40 = vsel %vm511_vm7, %v508_v38, %v512_v39 }
 0x34a   :  { %v514_v41 = vmul.f32 1.4142135, %v513_v40 }
 0x34c   :  { %v509_v42 = vpop.f32.mrf.mxu0  ;;  %v515_v43 = vpack.c.bf16 %v514_v41, %v514_v41 }
 0x34e   :  { %594 = vmatmul.bf16.vlgmr.msrb.gmra.mxu1 %v515_v43 }
 0x3cb   :  { %v595_v53 = vpop.f32.mrf.mxu1 }
 0x3cc   :  { %v596_v54 = vadd.f32 %v1131_v52, %v595_v53 }
 0x3ce   :  { %vm599_vm8 = vcmp.ge.f32.partialorder %v596_v54, 0.0  ;;  %v600_v55 = vmul.f32 0.2, %v596_v54 }
 0x3d0   :  { %v601_v56 = vsel %vm599_vm8, %v596_v54, %v600_v55 }
 0x3d1   :  { %v602_v57 = vmul.f32 1.4142135, %v601_v56 }
 0x3d3   :  { %v597_v58 = vpop.f32.mrf.mxu1  ;;  %v603_v59 = vpack.c.bf16 %v602_v57, %v602_v57 }
 0x3d5   :  { %682 = vmatmul.bf16.vlgmr.msrb.gmra.mxu2 %v603_v59 }
 0x458   :  { %v683_v63 = vpop.f32.mrf.mxu2 }
 0x459   :  { %v684_v0 = vadd.f32 %v1132_v62, %v683_v63 }
 0x45b   :  { %vm687_vm9 = vcmp.ge.f32.partialorder %v684_v0, 0.0  ;;  %v688_v1 = vmul.f32 0.2, %v684_v0 }
 0x45d   :  { %v689_v2 = vsel %vm687_vm9, %v684_v0, %v688_v1 }
 0x45e   :  { %v690_v3 = vmul.f32 1.4142135, %v689_v2 }
 0x460   :  { %v685_v4 = vpop.f32.mrf.mxu2  ;;  %v691_v5 = vpack.c.bf16 %v690_v3, %v690_v3 }
 0x462   :  { %770 = vmatmul.bf16.vlgmr.msrb.gmra.mxu3 %v691_v5 }
 0x4e5   :  { %v771_v7 = vpop.f32.mrf.mxu3 }
 0x4e6   :  { %v772_v8 = vadd.f32 %v1133_v6, %v771_v7 }
 0x4e8   :  { %vm775_vm10 = vcmp.ge.f32.partialorder %v772_v8, 0.0  ;;  %v776_v9 = vmul.f32 0.2, %v772_v8 }
 0x4ea   :  { %v777_v10 = vsel %vm775_vm10, %v772_v8, %v776_v9 }
 0x4eb   :  { %v778_v11 = vmul.f32 1.4142135, %v777_v10 }
 0x4ed   :  { %779 = vst [vmem:[#allocation8] sm:$0xff] %v778_v11  ;;  %v773_v12 = vpop.f32.mrf.mxu3 }
 0x4ee   :  { %790 = dma.vmem_to_hbm [thread:$0]  %s786_s2, 128, %s788_s5, [#allocation4]  }
 0x4ef   :  { %1236 = dma.done.wait [#allocation4], 128  }
 0x4f0   :  { %1237 = vsyncadd [#allocation4], 4294967168 }
 0x4f1   :  { %795 = vsyncpa [#allocation3], 1 }
 0x4f2   :  { %796 = vsyncpa [#allocation6], 1 }
 0x4f3   :  { %797 = vsyncpa [#allocation4], 1 }

</bundles_post_ra>
